<compile_context>
chip_gen: v7x
topology: tpu7x:2x2x1
jax: 0.10.0
libtpu: 0.0.40
codegen_flags: <defaults>
</compile_context>

<pallas_src>
import functools

import jax
import jax.numpy as jnp
from jax.experimental import pallas as pl
from jax.experimental.pallas import tpu as pltpu

NEG_SLOPE = 0.01  # torch nn.LeakyReLU default negative_slope


def _leaky(x):
    return jnp.where(x >= 0, x, NEG_SLOPE * x)


def _default_elementwise_dtype():
    """bf16 elementwise on chips with a bf16 VPU/EUP (v6e/v7x), f32 otherwise."""
    try:
        kind = jax.devices()[0].device_kind.lower()
    except Exception:
        return jnp.float32
    if ("v6" in kind) or ("v7" in kind):
        return jnp.bfloat16
    return jnp.float32  # v2/v3/v4/v5*: no bf16 VPU/EUP path


def ata_kernel(x_ref, w1_ref, w2_ref, sel_ref, o_ref, *,
               matmul_dtype, elementwise_dtype):
    # x_ref  : (BH, 3C, N*S)  already in matmul_dtype (no in-kernel full copy)
    # w1_ref : (BH, TDp, 3C)  grouped "in_conv" weights  (TD zero-padded to TDp)
    # w2_ref : (BH, 3C, TDp)  grouped "out_conv" weights
    # sel_ref: (N*S, N)       0/1 selector (elementwise dtype), sel[k,n]=1 iff k//S==n
    # o_ref  : (BH, C, N)
    x = x_ref[...]
    bh, tc, ns = x.shape
    c = tc // 3

    # grouped 1x1 conv #1 == per-group matmul; big free dim (N*S) on lanes,
    # f32 accumulation on the MXU.
    inter = jnp.einsum('gij,gjs->gis', w1_ref[...], x,
                       preferred_element_type=jnp.float32)
    inter = _leaky(inter).astype(matmul_dtype)                    # (BH, TDp, NS)

    # grouped 1x1 conv #2 -> attention logits (f32 accumulation).
    logits = jnp.einsum('gij,gjs->gis', w2_ref[...], inter,
                        preferred_element_type=jnp.float32)       # (BH, 3C, NS)

    # sigmoid + attn*x path in the chip-appropriate elementwise dtype
    # (bf16 on v6e/v7x rides the bf16 EUP/VPU; f32 on v5e).
    attn = jax.nn.sigmoid(logits.astype(elementwise_dtype))       # (BH, 3C, NS)
    xe = x if x.dtype == elementwise_dtype else x.astype(elementwise_dtype)

    # Fused multiply + fold over the "3" sub-axis of the per-group (3, C)
    # channel layout -- no full-size `prod` temporary is materialized.
    # NOTE: slices are on the sublane axis; keep C a multiple of 8 (f32) /
    # 16 (bf16 elementwise) to avoid relayouts.
    prod_f = (attn[:, 0 * c:1 * c] * xe[:, 0 * c:1 * c]
              + attn[:, 1 * c:2 * c] * xe[:, 1 * c:2 * c]
              + attn[:, 2 * c:3 * c] * xe[:, 2 * c:3 * c])        # (BH, C, NS)
    attn_f = (attn[:, 0 * c:1 * c]
              + attn[:, 1 * c:2 * c]
              + attn[:, 2 * c:3 * c])                             # (BH, C, NS)

    # per-batch-element sum over S == matmul against the (N*S, N) selector:
    # rides the MXU with f32 accumulation instead of an XLU lane reduce.
    sel = sel_ref[...]
    n = sel.shape[-1]
    num = jnp.dot(prod_f.reshape(bh * c, ns), sel,
                  preferred_element_type=jnp.float32).reshape(bh, c, n)
    den = jnp.dot(attn_f.reshape(bh * c, ns), sel,
                  preferred_element_type=jnp.float32).reshape(bh, c, n)

    # exact f32 division on a tiny (BH, C, N) tile; sigmoid > 0 => den > 0.
    o_ref[...] = _leaky(num / den).astype(o_ref.dtype)


def _pick_block_h(h, tc, ns, x_bytes, *, target_steps=8, budget_bytes=2 << 20):
    """Largest divisor of h that (a) leaves >= target_steps grid steps (>= 4
    per v7x TensorCore so DMA overlaps compute) and (b) keeps the x block
    under ~2 MiB, so per-step VMEM (2x double-buffered x + attn + folded prod
    + inter) stays comfortably inside v5e's 16 MiB scoped default."""
    cap = max(1, h // target_steps)
    best = 1
    for bh in range(1, cap + 1):
        if h % bh == 0 and bh * tc * ns * x_bytes <= budget_bytes:
            best = bh
    return best


def _estimate_vmem_bytes(bh, tc, td_pad, ns, n, x_bytes, mat_bytes, ew_bytes):
    """Rough per-step VMEM footprint (double-buffered blocks + intermediates)."""
    c = tc // 3
    xblk = bh * tc * ns * x_bytes
    wblk = 2 * bh * td_pad * tc * mat_bytes
    sel = ns * n * ew_bytes
    inter = bh * td_pad * ns * (4 + mat_bytes)   # f32 matmul result + cast copy
    attn = bh * tc * ns * (4 + ew_bytes)         # f32 logits + elementwise copy
    folds = 2 * bh * c * ns * ew_bytes
    outs = bh * c * n * 8
    return 2 * (xblk + wblk) + sel + inter + attn + folds + outs


def ata_forward(t, w_in, w_out, part_num, div, *,
                matmul_dtype=jnp.bfloat16, elementwise_dtype=None,
                block_h=None):
    """t: (N, S, C, H, 3); w_in: (H*3C//div, 3C, 1); w_out: (H*3C, 3C//div, 1)."""
    n, s, c, h, w = t.shape
    assert w == 3 and h == part_num
    tc = 3 * c
    assert tc % div == 0
    td = tc // div
    ns = n * s

    if elementwise_dtype is None:
        elementwise_dtype = (jnp.float32 if jnp.dtype(matmul_dtype) == jnp.dtype(jnp.float32)
                             else _default_elementwise_dtype())

    has_bf16 = (jnp.dtype(matmul_dtype) == jnp.dtype(jnp.bfloat16)
                or jnp.dtype(elementwise_dtype) == jnp.dtype(jnp.bfloat16))
    sub = 16 if has_bf16 else 8
    td_pad = ((td + sub - 1) // sub) * sub

    # Layout glue: present x as (H, 3C, N*S) with the matmul free dim (lane
    # axis) = N*S, casting to the matmul dtype in the same pass (halves the
    # HBM write of the transposed copy and the kernel's dominant read).
    # TODO(synk): in a full model, emit t directly in (H, 3C, N*S) layout /
    # matmul dtype upstream so this transpose fuses with the producer instead
    # of costing an extra HBM round trip.
    x = jnp.transpose(t, (3, 4, 2, 0, 1)).reshape(h, tc, ns).astype(matmul_dtype)

    w1 = w_in.reshape(h, td, tc).astype(matmul_dtype)               # (H, TD, 3C)
    w2 = w_out.reshape(h, tc, td).astype(matmul_dtype)              # (H, 3C, TD)
    if td_pad != td:
        # Zero padding: padded inter rows are exactly 0 and padded w2 columns
        # multiply them, so the result is unchanged.
        w1 = jnp.pad(w1, ((0, 0), (0, td_pad - td), (0, 0)))
        w2 = jnp.pad(w2, ((0, 0), (0, 0), (0, td_pad - td)))

    # 0/1 selector: column b picks the S lanes belonging to batch element b.
    sel = (jnp.arange(ns, dtype=jnp.int32)[:, None] // s
           == jnp.arange(n, dtype=jnp.int32)[None, :]).astype(elementwise_dtype)

    x_bytes = jnp.dtype(matmul_dtype).itemsize
    if block_h is None:
        block_h = _pick_block_h(h, tc, ns, x_bytes)
    assert h % block_h == 0

    est = _estimate_vmem_bytes(block_h, tc, td_pad, ns, n, x_bytes,
                               jnp.dtype(matmul_dtype).itemsize,
                               jnp.dtype(elementwise_dtype).itemsize)
    # Generous but bounded scoped-VMEM limit: at least 2x the estimated
    # per-step footprint, capped under v7x's 64 MiB physical VMEM.
    vmem_limit = int(min(64 << 20, max(32 << 20, 2 * est)))

    kernel = functools.partial(ata_kernel, matmul_dtype=matmul_dtype,
                               elementwise_dtype=elementwise_dtype)

    out = pl.pallas_call(
        kernel,
        out_shape=jax.ShapeDtypeStruct((h, c, n), t.dtype),
        grid_spec=pltpu.PrefetchScalarGridSpec(
            num_scalar_prefetch=0,
            grid=(h // block_h,),
            in_specs=[
                pl.BlockSpec((block_h, tc, ns), lambda g: (g, 0, 0)),
                pl.BlockSpec((block_h, td_pad, tc), lambda g: (g, 0, 0)),
                pl.BlockSpec((block_h, tc, td_pad), lambda g: (g, 0, 0)),
                pl.BlockSpec((ns, n), lambda g: (0, 0)),
            ],
            out_specs=pl.BlockSpec((block_h, c, n), lambda g: (g, 0, 0)),
        ),
        compiler_params=pltpu.CompilerParams(
            dimension_semantics=("parallel",),
            vmem_limit_bytes=vmem_limit),
    )(x, w1, w2, sel)

    # Output traffic is only 1/(3*S) of the input traffic; this transpose is
    # negligible (no lane-dense store restructuring needed).
    return jnp.transpose(out, (2, 1, 0))   # (N, C, H)


def ata_reference(t, w_in, w_out, part_num, div):
    """Pure-JAX f32 reference matching the PyTorch forward exactly."""
    n, s, c, h, _ = t.shape
    tc, td = 3 * c, 3 * c // div
    x = jnp.transpose(t, (0, 3, 4, 2, 1)).reshape(n, h, tc, s)
    w1 = w_in.reshape(h, td, tc)
    w2 = w_out.reshape(h, tc, td)
    inter = _leaky(jnp.einsum('hij,nhjs->nhis', w1, x))
    attn = jax.nn.sigmoid(jnp.einsum('hij,nhis->nhjs', jnp.swapaxes(w2, 1, 2), inter))
    prod = (attn * x).reshape(n, h, 3, c, s).sum(axis=2).sum(axis=-1)
    den = attn.reshape(n, h, 3, c, s).sum(axis=2).sum(axis=-1)
    ws = _leaky(prod / den)
    return jnp.transpose(ws, (0, 2, 1))


if __name__ == "__main__":
    # Small shapes consistent with the module: part_num == H, spatial width == 3.
    # C is kept a multiple of 16 so the in-kernel 3-fold slices stay aligned,
    # and N*S = 128 keeps the matmul lane axis dense.
    N, S, C, H = 2, 64, 16, 8
    PART_NUM, DIV = H, 4
    TC, TD = 3 * C, (3 * C) // DIV

    key = jax.random.PRNGKey(0)
    k_t, k_w1, k_w2 = jax.random.split(key, 3)

    t = jax.random.normal(k_t, (N, S, C, H, 3), dtype=jnp.float32)
    # torch Conv1d weight shapes: (out_channels, in_channels/groups, kernel=1)
    w_in = 0.1 * jax.random.normal(k_w1, (PART_NUM * TD, TC, 1), dtype=jnp.float32)
    w_out = 0.1 * jax.random.normal(k_w2, (PART_NUM * TC, TD, 1), dtype=jnp.float32)

    ref = ata_reference(t, w_in, w_out, PART_NUM, DIV)

    # f32 path: tight check against the pure-f32 reference.
    out_f32 = jax.block_until_ready(
        ata_forward(t, w_in, w_out, PART_NUM, DIV, matmul_dtype=jnp.float32))
    assert out_f32.shape == (N, C, H), out_f32.shape
    assert jnp.allclose(out_f32, ref, rtol=5e-3, atol=5e-3), "f32 kernel mismatch"

    # Fast path: bf16 input/matmuls, chip-gated elementwise dtype (bf16 on
    # v6e/v7x, f32 on v5e); correspondingly looser tolerance.
    out_fast = jax.block_until_ready(
        ata_forward(t, w_in, w_out, PART_NUM, DIV, matmul_dtype=jnp.bfloat16))
    assert out_fast.shape == (N, C, H), out_fast.shape
    assert jnp.allclose(out_fast, ref, rtol=4e-2, atol=4e-2), "bf16 kernel mismatch"

    print("KERNEL_OK")
</pallas_src>

<mosaic_0001>
module attributes {stable_mosaic.version = 11 : i64} {
  func.func @ata_kernel(%arg0: i32, %arg1: memref<1x48x128xf32, #tpu.memory_space<vmem>>, %arg2: memref<1x16x48xf32, #tpu.memory_space<vmem>>, %arg3: memref<1x48x16xf32, #tpu.memory_space<vmem>>, %arg4: memref<128x2xf32, #tpu.memory_space<vmem>>, %arg5: memref<1x16x2xf32, #tpu.memory_space<vmem>>) attributes {dimension_semantics = [#tpu.dimension_semantics<parallel>], iteration_bounds = array<i64: 8>, scalar_prefetch = 0 : i64, scratch_operands = 0 : i64, tpu.core_type = #tpu.core_type<tc>, window_params = [{transform_indices = @transform_0, window_bounds = array<i64: 1, 48, 128>}, {transform_indices = @transform_1, window_bounds = array<i64: 1, 16, 48>}, {transform_indices = @transform_2, window_bounds = array<i64: 1, 48, 16>}, {pipeline_mode = #tpu.pipeline_mode<synchronous>, transform_indices = @transform_3, window_bounds = array<i64: 128, 2>}, {transform_indices = @transform_4, window_bounds = array<i64: 1, 16, 2>}]} {
    %c0 = arith.constant 0 : index
    %c0_0 = arith.constant 0 : index
    %c0_1 = arith.constant 0 : index
    %0 = vector.load %arg1[%c0, %c0_0, %c0_1] : memref<1x48x128xf32, #tpu.memory_space<vmem>>, vector<1x48x128xf32>
    %c0_2 = arith.constant 0 : index
    %c0_3 = arith.constant 0 : index
    %c0_4 = arith.constant 0 : index
    %1 = vector.load %arg2[%c0_2, %c0_3, %c0_4] : memref<1x16x48xf32, #tpu.memory_space<vmem>>, vector<1x16x48xf32>
    "tpu.trace_start"() <{level = 10 : i32, message = "gij,gjs->gis"}> : () -> ()
    %cst = arith.constant dense<0.000000e+00> : vector<1x16x128xf32>
    %2 = tpu.matmul %1, %0, %cst {dimension_numbers = #tpu.dot_dimension_numbers<[2], [1], [1], [2], [0, 0, 0, 1, 1, 2], [0], [0]>} : vector<1x16x48xf32>, vector<1x48x128xf32>, vector<1x16x128xf32> -> vector<1x16x128xf32>
    %cst_5 = arith.constant 0.000000e+00 : f32
    "tpu.trace_stop"() : () -> ()
    %3 = vector.broadcast %cst_5 : f32 to vector<1x16x128xf32>
    %4 = arith.cmpf oge, %2, %3 : vector<1x16x128xf32>
    %cst_6 = arith.constant 0.00999999977 : f32
    %5 = vector.broadcast %cst_6 : f32 to vector<1x16x128xf32>
    %6 = arith.mulf %5, %2 : vector<1x16x128xf32>
    %7 = arith.select %4, %2, %6 : vector<1x16x128xi1>, vector<1x16x128xf32>
    %c0_7 = arith.constant 0 : index
    %c0_8 = arith.constant 0 : index
    %c0_9 = arith.constant 0 : index
    %8 = vector.load %arg3[%c0_7, %c0_8, %c0_9] : memref<1x48x16xf32, #tpu.memory_space<vmem>>, vector<1x48x16xf32>
    "tpu.trace_start"() <{level = 10 : i32, message = "gij,gjs->gis"}> : () -> ()
    %cst_10 = arith.constant dense<0.000000e+00> : vector<1x48x128xf32>
    %9 = tpu.matmul %8, %7, %cst_10 {dimension_numbers = #tpu.dot_dimension_numbers<[2], [1], [1], [2], [0, 0, 0, 1, 1, 2], [0], [0]>} : vector<1x48x16xf32>, vector<1x16x128xf32>, vector<1x48x128xf32> -> vector<1x48x128xf32>
    "tpu.trace_stop"() : () -> ()
    %10 = arith.negf %9 : vector<1x48x128xf32>
    %11 = math.exp %10 : vector<1x48x128xf32>
    %cst_11 = arith.constant 1.000000e+00 : f32
    %12 = vector.broadcast %cst_11 : f32 to vector<1x48x128xf32>
    %13 = arith.addf %12, %11 : vector<1x48x128xf32>
    %14 = arith.divf %12, %13 : vector<1x48x128xf32>
    %15 = vector.extract_strided_slice %14 {offsets = [0, 0, 0], sizes = [1, 16, 128], strides = [1, 1, 1]} : vector<1x48x128xf32> to vector<1x16x128xf32>
    %16 = vector.extract_strided_slice %0 {offsets = [0, 0, 0], sizes = [1, 16, 128], strides = [1, 1, 1]} : vector<1x48x128xf32> to vector<1x16x128xf32>
    %17 = arith.mulf %15, %16 : vector<1x16x128xf32>
    %18 = vector.extract_strided_slice %14 {offsets = [0, 16, 0], sizes = [1, 16, 128], strides = [1, 1, 1]} : vector<1x48x128xf32> to vector<1x16x128xf32>
    %19 = vector.extract_strided_slice %0 {offsets = [0, 16, 0], sizes = [1, 16, 128], strides = [1, 1, 1]} : vector<1x48x128xf32> to vector<1x16x128xf32>
    %20 = arith.mulf %18, %19 : vector<1x16x128xf32>
    %21 = arith.addf %17, %20 : vector<1x16x128xf32>
    %22 = vector.extract_strided_slice %14 {offsets = [0, 32, 0], sizes = [1, 16, 128], strides = [1, 1, 1]} : vector<1x48x128xf32> to vector<1x16x128xf32>
    %23 = vector.extract_strided_slice %0 {offsets = [0, 32, 0], sizes = [1, 16, 128], strides = [1, 1, 1]} : vector<1x48x128xf32> to vector<1x16x128xf32>
    %24 = arith.mulf %22, %23 : vector<1x16x128xf32>
    %25 = arith.addf %21, %24 : vector<1x16x128xf32>
    %26 = vector.extract_strided_slice %14 {offsets = [0, 0, 0], sizes = [1, 16, 128], strides = [1, 1, 1]} : vector<1x48x128xf32> to vector<1x16x128xf32>
    %27 = vector.extract_strided_slice %14 {offsets = [0, 16, 0], sizes = [1, 16, 128], strides = [1, 1, 1]} : vector<1x48x128xf32> to vector<1x16x128xf32>
    %28 = arith.addf %26, %27 : vector<1x16x128xf32>
    %29 = vector.extract_strided_slice %14 {offsets = [0, 32, 0], sizes = [1, 16, 128], strides = [1, 1, 1]} : vector<1x48x128xf32> to vector<1x16x128xf32>
    %30 = arith.addf %28, %29 : vector<1x16x128xf32>
    %c0_12 = arith.constant 0 : index
    %c0_13 = arith.constant 0 : index
    %31 = vector.load %arg4[%c0_12, %c0_13] : memref<128x2xf32, #tpu.memory_space<vmem>>, vector<128x2xf32>
    %32 = vector.shape_cast %25 : vector<1x16x128xf32> to vector<16x128xf32>
    %cst_14 = arith.constant dense<0.000000e+00> : vector<16x2xf32>
    %33 = tpu.matmul %32, %31, %cst_14 {dimension_numbers = #tpu.dot_dimension_numbers<[1], [0], [0], [1], [0, 0, 1, 1], [], []>} : vector<16x128xf32>, vector<128x2xf32>, vector<16x2xf32> -> vector<16x2xf32>
    %34 = vector.shape_cast %33 : vector<16x2xf32> to vector<1x16x2xf32>
    %35 = vector.shape_cast %30 : vector<1x16x128xf32> to vector<16x128xf32>
    %cst_15 = arith.constant dense<0.000000e+00> : vector<16x2xf32>
    %36 = tpu.matmul %35, %31, %cst_15 {dimension_numbers = #tpu.dot_dimension_numbers<[1], [0], [0], [1], [0, 0, 1, 1], [], []>} : vector<16x128xf32>, vector<128x2xf32>, vector<16x2xf32> -> vector<16x2xf32>
    %37 = vector.shape_cast %36 : vector<16x2xf32> to vector<1x16x2xf32>
    %38 = arith.divf %34, %37 : vector<1x16x2xf32>
    %cst_16 = arith.constant 0.000000e+00 : f32
    %39 = vector.broadcast %cst_16 : f32 to vector<1x16x2xf32>
    %40 = arith.cmpf oge, %38, %39 : vector<1x16x2xf32>
    %cst_17 = arith.constant 0.00999999977 : f32
    %41 = vector.broadcast %cst_17 : f32 to vector<1x16x2xf32>
    %42 = arith.mulf %41, %38 : vector<1x16x2xf32>
    %43 = arith.select %40, %38, %42 : vector<1x16x2xi1>, vector<1x16x2xf32>
    %c0_18 = arith.constant 0 : index
    %c0_19 = arith.constant 0 : index
    %c0_20 = arith.constant 0 : index
    %44 = vector.load %arg5[%c0_18, %c0_19, %c0_20] : memref<1x16x2xf32, #tpu.memory_space<vmem>>, vector<1x16x2xf32>
    tpu.vector_store %arg5[%c0_18, %c0_19, %c0_20], %43 {strides = array<i32>} : memref<1x16x2xf32, #tpu.memory_space<vmem>>, vector<1x16x2xf32>,
    return
  }
  func.func @transform_0(%arg0: i32) -> (i32, i32, i32) {
    %c0_i32 = arith.constant 0 : i32
    %c0_i32_0 = arith.constant 0 : i32
    %c0_i32_1 = arith.constant 0 : i32
    return %arg0, %c0_i32, %c0_i32_0 : i32, i32, i32
  }
  func.func @transform_1(%arg0: i32) -> (i32, i32, i32) {
    %c0_i32 = arith.constant 0 : i32
    %c0_i32_0 = arith.constant 0 : i32
    %c0_i32_1 = arith.constant 0 : i32
    return %arg0, %c0_i32, %c0_i32_0 : i32, i32, i32
  }
  func.func @transform_2(%arg0: i32) -> (i32, i32, i32) {
    %c0_i32 = arith.constant 0 : i32
    %c0_i32_0 = arith.constant 0 : i32
    %c0_i32_1 = arith.constant 0 : i32
    return %arg0, %c0_i32, %c0_i32_0 : i32, i32, i32
  }
  func.func @transform_3(%arg0: i32) -> (i32, i32) {
    %c0_i32 = arith.constant 0 : i32
    %c0_i32_0 = arith.constant 0 : i32
    %c0_i32_1 = arith.constant 0 : i32
    return %c0_i32, %c0_i32_0 : i32, i32
  }
  func.func @transform_4(%arg0: i32) -> (i32, i32, i32) {
    %c0_i32 = arith.constant 0 : i32
    %c0_i32_0 = arith.constant 0 : i32
    %c0_i32_1 = arith.constant 0 : i32
    return %arg0, %c0_i32, %c0_i32_0 : i32, i32, i32
  }
}

</mosaic_0001>

<bundles_post_ra>
// kernel: tpu_custom_call.1
= control target key start
LH: loop header
LB: loop body
LE: loop exit
PB: predicated region body
PF: predicated region fallthrough
CT: control target
= control target key end

     0   :  { %s1091_s15 = smov 0   ;;  %s1202_s0 = inlined_call_operand.vmem [shape: f32[8,48,128], index: 0, kind: input, shape index: {}]   ;;  %s1203_s1 = inlined_call_operand.vmem [shape: f32[8,16,48], index: 1, kind: input, shape index: {}]   ;;  %s1204_s2 = inlined_call_operand.vmem [shape: f32[8,48,16], index: 2, kind: input, shape index: {}]   ;;  %s1205_s3 = inlined_call_operand.vmem [shape: f32[128,2], index: 3, kind: input, shape index: {}]   ;;  %s1206_s4 = inlined_call_operand.vmem [shape: f32[8,16,2], index: 4, kind: output, shape index: {}]  }
   0x1 LB: > { %s762_s16 = sadd.s32 4294967295, %s1064_s15   ;;  %p766_p0 = scmp.ge.s32.totalorder %s1064_s15, 1  ;;  %s1064_s15 = sphi %s1091_s15, %s14_s15  }
   0x2   : > { %p182_p1 = scmp.lt.s32.totalorder %s1064_s15, 9 }
   0x4   : > { %p183_p2 = pnand %p766_p0, %p182_p1 }
   0x5   : > { %p218_p3 = scmp.lt.s32.totalorder (!%p183_p2), %s762_s16, 7  ;;  %vm246_vm0 = vcmask (!%p183_p2), 392192   ;;  %vm340_vm1 = vcmask (!%p183_p2), 130048   ;;  %v504_v24 = vld [vmem:[%s1205_s3] sm:$0xff] (!%p183_p2)  ;;  %v505_v25 = vld [vmem:[%s1205_s3 + $0x8] sm:$0xff] (!%p183_p2)  ;;  %v506_v27 = vld [vmem:[%s1205_s3 + $0x10] sm:$0xff] (!%p183_p2) }
   0x6   : > { %186 = sbr.rel (%p183_p2) target bundleno = 734 (0x2de), region = 36  ;;  %v957_v26 = vpack.c.bf16 (!%p183_p2), %v505_v25, %v504_v24  ;;  %v507_v28 = vld [vmem:[%s1205_s3 + $0x18] sm:$0xff] (!%p183_p2)  ;;  %v508_v30 = vld [vmem:[%s1205_s3 + $0x20] sm:$0xff] (!%p183_p2)  ;;  %v509_v31 = vld [vmem:[%s1205_s3 + $0x28] sm:$0xff] (!%p183_p2)  ;;  %vm680_vm5 = vcmask (!%p183_p2), 15360  }
   0x7   : > { %v961_v29 = vpack.c.bf16 (!%p183_p2), %v507_v28, %v506_v27  ;;  %v965_v32 = vpack.c.bf16 (!%p183_p2), %v509_v31, %v508_v30  ;;  %v510_v33 = vld [vmem:[%s1205_s3 + $0x30] sm:$0xff] (!%p183_p2)  ;;  %v511_v34 = vld [vmem:[%s1205_s3 + $0x38] sm:$0xff] (!%p183_p2)  ;;  %v512_v36 = vld [vmem:[%s1205_s3 + $0x40] sm:$0xff] (!%p183_p2) }
   0x8   : > { %v969_v35 = vpack.c.bf16 (!%p183_p2), %v511_v34, %v510_v33  ;;  %v513_v37 = vld [vmem:[%s1205_s3 + $0x48] sm:$0xff] (!%p183_p2)  ;;  %v514_v39 = vld [vmem:[%s1205_s3 + $0x50] sm:$0xff] (!%p183_p2)  ;;  %v515_v40 = vld [vmem:[%s1205_s3 + $0x58] sm:$0xff] (!%p183_p2) }
   0x9   : > { %v973_v38 = vpack.c.bf16 (!%p183_p2), %v513_v37, %v512_v36  ;;  %v977_v41 = vpack.c.bf16 (!%p183_p2), %v515_v40, %v514_v39  ;;  %v516_v42 = vld [vmem:[%s1205_s3 + $0x60] sm:$0xff] (!%p183_p2)  ;;  %v517_v43 = vld [vmem:[%s1205_s3 + $0x68] sm:$0xff] (!%p183_p2)  ;;  %v518_v45 = vld [vmem:[%s1205_s3 + $0x70] sm:$0xff] (!%p183_p2) }
   0xa   : > { %v981_v44 = vpack.c.bf16 (!%p183_p2), %v517_v43, %v516_v42  ;;  %v519_v46 = vld [vmem:[%s1205_s3 + $0x78] sm:$0xff] (!%p183_p2) }
   0xb   : > { %v985_v47 = vpack.c.bf16 (!%p183_p2), %v519_v46, %v518_v45 }
   0xd   : > { %s1208_s16 = smov (!%p218_p3, %s762_s16), 7 }
   0xe   : > { %s1021_s17 = smul.u32 48, %s1208_s16  ;;  %s789_s18 = sshll.u32 %s1208_s16, 4 }
   0xf   : > { %s227_s21 = scalar_lea.vmem %s1203_s1, %s789_s18  ;;  %s237_s13 = scalar_lea.vmem %s1206_s4, %s789_s18 }
  0x10   : > { %s222_s24 = scalar_lea.vmem %s1202_s0, %s1021_s17  ;;  %v244_v0 = vld [vmem:[%s227_s21] sm:$0xff]  ;;  %v245_v10 = vld [vmem:[%s227_s21 + $0x8] sm:$0xff]  ;;  %s232_s27 = scalar_lea.vmem %s1204_s2, %s1021_s17 }
  0x11   : > { %v1111_v1 = vld [vmem:[%s222_s24] sm:$0xff]  ;;  %v1113_v2 = vld [vmem:[%s222_s24 + $0x8] sm:$0xff]  ;;  %v1115_v3 = vld [vmem:[%s222_s24 + $0x10] sm:$0xff]  ;;  %855 = vmatprep.mubr.msk.f32.mxu0 %vm246_vm0, %v244_v0 }
  0x12   : > { %v941_v4 = vpack.c.bf16 %v1113_v2, %v1111_v1  ;;  %v1120_v5 = vld [vmem:[%s222_s24 + $0x18] sm:$0xff]  ;;  %v1124_v7 = vld [vmem:[%s222_s24 + $0x20] sm:$0xff]  ;;  %v1126_v8 = vld [vmem:[%s222_s24 + $0x28] sm:$0xff] }
  0x13   : > { %v945_v6 = vpack.c.bf16 %v1120_v5, %v1115_v3  ;;  %v949_v9 = vpack.c.bf16 %v1126_v8, %v1124_v7  ;;  %v334_v11 = vld [vmem:[%s232_s27] sm:$0xff]  ;;  %v335_v19 = vld [vmem:[%s232_s27 + $0x8] sm:$0xff]  ;;  %v336_v20 = vld [vmem:[%s232_s27 + $0x10] sm:$0xff] }
  0x14   : > { %942 = vmatprep.subr.bf16.mxu0 %v941_v4  ;;  %862 = vmatprep.mubr.msk.f32.mxu1 %vm340_vm1, %v334_v11  ;;  %v337_v21 = vld [vmem:[%s232_s27 + $0x18] sm:$0xff]  ;;  %v338_v22 = vld [vmem:[%s232_s27 + $0x20] sm:$0xff]  ;;  %v339_v23 = vld [vmem:[%s232_s27 + $0x28] sm:$0xff] }
  0x15   : > { %944 = vmatpush3.bf16.msra.mxu0 %v941_v4 }
  0x16   : > { %946 = vmatprep.subr.bf16.mxu0 %v945_v6 }
  0x19   : > { %948 = vmatpush3.bf16.msra.mxu0 %v945_v6 }
  0x1a   : > { %950 = vmatprep.subr.bf16.mxu0 %v949_v9 }
  0x1d   : > { %952 = vmatpush3.bf16.msra.mxu0 %v949_v9 }
  0x1e   : > { %990 = vmatprep.subr.bf16.mxu0 %v957_v26 }
  0x20   : > { %856 = vmatmul.mubr.msk.f32.vlgmr.msra.gmra.mrb[0].mxu0 %vm246_vm0, %v245_v10 }
  0x21   : > { %992 = vmatpush3.bf16.msra.mxu0 %v957_v26 }
  0x22   : > { %994 = vmatprep.subr.bf16.mxu0 %v961_v29 }
  0x25   : > { %996 = vmatpush3.bf16.msra.mxu0 %v961_v29 }
  0x26   : > { %998 = vmatprep.subr.bf16.mxu0 %v965_v32 }
  0x29   : > { %1000 = vmatpush3.bf16.msra.mxu0 %v965_v32 }
  0x2a   : > { %1002 = vmatprep.subr.bf16.mxu0 %v969_v35 }
  0x2d   : > { %1004 = vmatpush3.bf16.msra.mxu0 %v969_v35 }
  0x2e   : > { %1006 = vmatprep.subr.bf16.mxu0 %v973_v38 }
  0x31   : > { %1008 = vmatpush3.bf16.msra.mxu0 %v973_v38 }
  0x32   : > { %1010 = vmatprep.subr.bf16.mxu0 %v977_v41 }
  0x35   : > { %1012 = vmatpush3.bf16.msra.mxu0 %v977_v41 }
  0x36   : > { %1014 = vmatprep.subr.bf16.mxu0 %v981_v44 }
  0x39   : > { %1016 = vmatpush3.bf16.msra.mxu0 %v981_v44 }
  0x3a   : > { %1018 = vmatprep.subr.bf16.mxu0 %v985_v47 }
  0x3d   : > { %1020 = vmatpush3.bf16.msra.mxu0 %v985_v47 }
  0xf3   : > { %v857_v12 = vpop.f32.mrb[0].mxu0 }
  0xf4   : > { %vm329_vm2 = vcmp.ge.f32.partialorder %v857_v12, 0.0  ;;  %v331_v13 = vmul.f32 0.01, %v857_v12  ;;  %v319_v14 = vpop.f32.mrb[1].mxu0 }
  0xf5   : > { %vm328_vm3 = vcmp.ge.f32.partialorder %v319_v14, 0.0  ;;  %v330_v15 = vmul.f32 0.01, %v319_v14 }
  0xf6   : > { %v333_v16 = vsel %vm329_vm2, %v857_v12, %v331_v13 }
  0xf7   : > { %v332_v17 = vsel %vm328_vm3, %v319_v14, %v330_v15 }
  0xf8   : > { %v953_v18 = vpack.c.bf16 %v333_v16, %v332_v17 }
  0xfa   : > { %954 = vmatprep.subr.bf16.mxu1 %v953_v18 }
  0xfb   : > { %956 = vmatpush3.bf16.msra.mxu1 %v953_v18 }
  0xfc   : > { %958 = vmatprep.subr.bf16.mxu1 %v957_v26 }
  0xfe   : > { %863 = vmatmul.mubr.msk.f32.vlgmr.msra.gmra.mrb[0].mxu1 %vm340_vm1, %v335_v19 }
  0xff   : > { %865 = vmatprep.mubr.msk.f32.mxu1 %vm340_vm1, %v336_v20  ;;  %960 = vmatpush3.bf16.msra.mxu1 %v957_v26 }
 0x100   : > { %962 = vmatprep.subr.bf16.mxu1 %v961_v29 }
 0x102   : > { %866 = vmatmul.mubr.msk.f32.gmra.mrb[2].mxu1 %vm340_vm1, %v337_v21 }
 0x103   : > { %868 = vmatprep.mubr.msk.f32.mxu1 %vm340_vm1, %v338_v22  ;;  %964 = vmatpush3.bf16.msra.mxu1 %v961_v29 }
 0x104   : > { %966 = vmatprep.subr.bf16.mxu1 %v965_v32 }
 0x106   : > { %869 = vmatmul.mubr.msk.f32.gmra.mrb[4].mxu1 %vm340_vm1, %v339_v23 }
 0x107   : > { %968 = vmatpush3.bf16.msra.mxu1 %v965_v32 }
 0x108   : > { %970 = vmatprep.subr.bf16.mxu1 %v969_v35 }
 0x10b   : > { %972 = vmatpush3.bf16.msra.mxu1 %v969_v35 }
 0x10c   : > { %974 = vmatprep.subr.bf16.mxu1 %v973_v38 }
 0x10f   : > { %976 = vmatpush3.bf16.msra.mxu1 %v973_v38 }
 0x110   : > { %978 = vmatprep.subr.bf16.mxu1 %v977_v41 }
 0x113   : > { %980 = vmatpush3.bf16.msra.mxu1 %v977_v41 }
 0x114   : > { %982 = vmatprep.subr.bf16.mxu1 %v981_v44 }
 0x117   : > { %984 = vmatpush3.bf16.msra.mxu1 %v981_v44 }
 0x118   : > { %986 = vmatprep.subr.bf16.mxu1 %v985_v47 }
 0x11b   : > { %988 = vmatpush3.bf16.msra.mxu1 %v985_v47 }
 0x1d1   : > { %v864_v48 = vpop.f32.mrb[0].mxu1 }
 0x1d2   : > { %v782_v49 = vmul.f32 -1.442695, %v864_v48  ;;  %v425_v50 = vpop.f32.mrb[1].mxu1 }
 0x1d3   : > { %v781_v51 = vmul.f32 -1.442695, %v425_v50 }
 0x1d4   : > { %1030 = vpow2.f32 %v782_v49 }
 0x1d5   : > { %1032 = vpow2.f32 %v781_v51  ;;  %v867_v52 = vpop.f32.mrb[2].mxu1 }
 0x1d6   : > { %v784_v53 = vmul.f32 -1.442695, %v867_v52  ;;  %v435_v54 = vpop.f32.mrb[3].mxu1 }
 0x1d7   : > { %v783_v55 = vmul.f32 -1.442695, %v435_v54 }
 0x1d8   : > { %1034 = vpow2.f32 %v784_v53 }
 0x1d9   : > { %1036 = vpow2.f32 %v783_v55  ;;  %v870_v56 = vpop.f32.mrb[4].mxu1 }
 0x1da   : > { %v786_v57 = vmul.f32 -1.442695, %v870_v56  ;;  %v445_v58 = vpop.f32.mrb[5].mxu1 }
 0x1db   : > { %v785_v59 = vmul.f32 -1.442695, %v445_v58 }
 0x1dc   : > { %1038 = vpow2.f32 %v786_v57 }
 0x1dd   : > { %1040 = vpow2.f32 %v785_v59 }
 0x1de   : > { %v1031_v60 = vpop.eup %1030 }
 0x1df   : > { %v1033_v61 = vpop.eup %1032  ;;  %v473_v62 = vadd.f32 1.0, %v1031_v60 }
 0x1e0   : > { %v472_v63 = vadd.f32 1.0, %v1033_v61 }
 0x1e1   : > { %1042 = vrcp.f32 %v473_v62 }
 0x1e2   : > { %v1035_v0 = vpop.eup %1034  ;;  %1044 = vrcp.f32 %v472_v63 }
 0x1e3   : > { %v1037_v4 = vpop.eup %1036  ;;  %v475_v6 = vadd.f32 1.0, %v1035_v0 }
 0x1e4   : > { %v474_v9 = vadd.f32 1.0, %v1037_v4 }
 0x1e5   : > { %1046 = vrcp.f32 %v475_v6 }
 0x1e6   : > { %v1039_v10 = vpop.eup %1038  ;;  %1048 = vrcp.f32 %v474_v9 }
 0x1e7   : > { %v1041_v11 = vpop.eup %1040  ;;  %v477_v12 = vadd.f32 1.0, %v1039_v10 }
 0x1e8   : > { %v476_v13 = vadd.f32 1.0, %v1041_v11 }
 0x1e9   : > { %1050 = vrcp.f32 %v477_v12 }
 0x1ea   : > { %1052 = vrcp.f32 %v476_v13 }
 0x1eb   : > { %v1043_v14 = vpop.eup %1042 }
 0x1ec   : > { %v1045_v15 = vpop.eup %1044  ;;  %v491_v18 = vmul.f32 %v1043_v14, %v1113_v2 }
 0x1ed   : > { %v490_v22 = vmul.f32 %v1045_v15, %v1111_v1 }
 0x1ef   : > { %v1047_v16 = vpop.eup %1046 }
 0x1f0   : > { %v1049_v17 = vpop.eup %1048  ;;  %v493_v19 = vmul.f32 %v1047_v16, %v1120_v5  ;;  %v501_v20 = vadd.f32 %v1047_v16, %v1043_v14 }
 0x1f1   : > { %v500_v21 = vadd.f32 %v1049_v17, %v1045_v15  ;;  %v492_v23 = vmul.f32 %v1049_v17, %v1115_v3 }
 0x1f2   : > { %v495_v24 = vadd.f32 %v493_v19, %v491_v18 }
 0x1f3   : > { %v1051_v25 = vpop.eup %1050  ;;  %v494_v26 = vadd.f32 %v492_v23, %v490_v22 }
 0x1f4   : > { %v1053_v27 = vpop.eup %1052  ;;  %v503_v28 = vadd.f32 %v1051_v25, %v501_v20  ;;  %v497_v29 = vmul.f32 %v1051_v25, %v1126_v8 }
 0x1f5   : > { %v502_v30 = vadd.f32 %v1053_v27, %v500_v21  ;;  %v496_v31 = vmul.f32 %v1053_v27, %v1124_v7 }
 0x1f6   : > { %v499_v32 = vadd.f32 %v497_v29, %v495_v24 }
 0x1f7   : > { %938 = vmatprep.mubr.f32.mxu0 %v502_v30  ;;  %v498_v2 = vadd.f32 %v496_v31, %v494_v26 }
 0x1f8   : > { %939 = vmatmul.mubr.f32.vlgmr.msra.gmra.mrb[2].mxu0 %v503_v28 }
 0x1f9   : > { %903 = vmatprep.mubr.f32.mxu1 %v498_v2 }
 0x1fa   : > { %904 = vmatmul.mubr.f32.vlgmr.msra.gmra.mrb[6].mxu1 %v499_v32 }
 0x2cb   : > { %v940_v1 = vpop.f32.mrb[2].mxu0 }
 0x2cc   : > { %1054 = vrcp.f32 %v940_v1  ;;  %v661_v3 = vpop.f32.mrb[3].mxu0 }
 0x2cd   : > { %1056 = vrcp.f32 %v661_v3  ;;  %v905_v5 = vpop.f32.mrb[6].mxu1 }
 0x2ce   : > { %v586_v33 = vpop.f32.mrb[7].mxu1 }
 0x2d6   : > { %v1055_v34 = vpop.eup %1054 }
 0x2d7   : > { %v1057_v35 = vpop.eup %1056  ;;  %v673_v36 = vmul.f32 %v1055_v34, %v905_v5 }
 0x2d8   : > { %v671_v8 = vmul.f32 %v1057_v35, %v586_v33 }
 0x2d9   : > { %vm675_vm4 = vcmp.ge.f32.partialorder %v673_v36, 0.0  ;;  %v677_v7 = vmul.f32 0.01, %v673_v36 }
 0x2da   : > { %vm674_vm6 = vcmp.ge.f32.partialorder %v671_v8, 0.0  ;;  %v676_v37 = vmul.f32 0.01, %v671_v8 }
 0x2db   : > { %v679_v38 = vsel %vm675_vm4, %v673_v36, %v677_v7 }
 0x2dc   : > { %682 = vst.msk [vmem:[%s237_s13 + $0x8] sm:$0xff] %vm680_vm5, %v679_v38  ;;  %v678_v39 = vsel %vm674_vm6, %v671_v8, %v676_v37 }
 0x2dd   : > { %681 = vst.msk [vmem:[%s237_s13] sm:$0xff] %vm680_vm5, %v678_v39 }
 0x2de PF: > { %s14_s15 = sadd.s32 1, %s1064_s15  }
 0x2df   : > { %p11_p4 = scmp.ge.s32.totalorder %s14_s15, 10  }
 0x2e1   :  { %13 = sbr.rel (!%p11_p4) target bundleno = 1 (0x1), region = 72 }

</bundles_post_ra>
